<compile_context>
chip_gen: v7x
topology: tpu7x:2x2x1
jax: 0.10.0
libtpu: 0.0.40
codegen_flags: <defaults>
</compile_context>

<pallas_src>
import jax
import jax.numpy as jnp
from jax.experimental import pallas as pl
from jax.experimental.pallas import tpu as pltpu

IN_F = 3   # linear1 in_features
HID = 3    # linear1 out_features == linear2 in_features
OUT_F = 3  # linear2 out_features

LANE = 128
MAX_TILE_M = 128 * 1024   # ~16 MiB double-buffered (in+out) working set at f32


def _fused_linear_kernel(x_ref, w_ref, b_ref, o_ref):
    # x_ref: (1, IN_F, TILE_M)  -- M on the lane axis (dense loads)
    # w_ref: (OUT_F, IN_F)      -- fused weight W2 @ W1
    # b_ref: (OUT_F, 1)         -- fused bias  W2 @ b1 + b2
    # o_ref: (1, OUT_F, TILE_M) -- output already in permuted (OUT_F, M) layout
    x = x_ref[0]          # (IN_F, TILE_M)
    w = w_ref[...]        # (OUT_F, IN_F)
    b = b_ref[...]        # (OUT_F, 1)

    # K=3 contraction on the VPU: out[o, m] = sum_c w[o, c] * x[c, m] + b[o]
    acc = w[:, 0:1] * x[0:1, :] + b                 # (OUT_F, TILE_M)
    for c in range(1, IN_F):                        # static unroll (IN_F = 3)
        acc = acc + w[:, c:c + 1] * x[c:c + 1, :]

    o_ref[0] = acc.astype(o_ref.dtype)


def _pick_tile_m(batch, m):
    """Lane-dense M tile: as large as VMEM comfortably allows, while keeping
    >= 2 grid steps along a 'parallel' axis so v7x can use both TensorCores."""
    if m <= LANE:
        return m                                    # single exact block (e.g. the (1,3,3) spec case)
    m_chunks = pl.cdiv(m, LANE)                     # number of 128-lane chunks
    cap_chunks = MAX_TILE_M // LANE
    if batch >= 2:
        chunks = min(m_chunks, cap_chunks)          # batch axis already gives >=2 parallel steps
    else:
        chunks = min(pl.cdiv(m_chunks, 2), cap_chunks)
    return chunks * LANE


def model_forward(x, w1, b1, w2, b2):
    """x: (B, M, IN_F) float32. Returns (B, OUT_F, M) float32 (== v3.permute(0, 2, 1))."""
    B, M, K = x.shape
    assert K == IN_F

    # Fuse the two linear layers in the wrapper (single tiny contraction + bias in-kernel).
    w_comb = jnp.dot(w2, w1)                          # (OUT_F, IN_F)
    b_comb = (jnp.dot(w2, b1) + b2).reshape(OUT_F, 1)

    # Present M on the last (lane) axis: (B, IN_F, M). No pad, no output slice.
    x_t = jnp.swapaxes(x, 1, 2)

    tile_m = _pick_tile_m(B, M)
    grid = (B, pl.cdiv(M, tile_m))                    # partial last block masked by Pallas

    out = pl.pallas_call(
        _fused_linear_kernel,
        out_shape=jax.ShapeDtypeStruct((B, OUT_F, M), x.dtype),
        grid_spec=pltpu.PrefetchScalarGridSpec(
            num_scalar_prefetch=0,
            grid=grid,
            in_specs=[
                pl.BlockSpec((1, IN_F, tile_m), lambda b, m: (b, 0, m)),
                pl.BlockSpec((OUT_F, IN_F), lambda b, m: (0, 0)),
                pl.BlockSpec((OUT_F, 1), lambda b, m: (0, 0)),
            ],
            out_specs=pl.BlockSpec((1, OUT_F, tile_m), lambda b, m: (b, 0, m)),
        ),
        compiler_params=pltpu.CompilerParams(
            dimension_semantics=("parallel", "parallel"),
            vmem_limit_bytes=32 * 1024 * 1024,
        ),
    )(x_t, w_comb, b_comb)
    return out


def _reference(x, w1, b1, w2, b2):
    v1 = jnp.einsum("bmk,nk->bmn", x, w1) + b1
    v3 = jnp.einsum("bmn,on->bmo", v1, w2) + b2
    return jnp.transpose(v3, (0, 2, 1))


if __name__ == "__main__":
    key = jax.random.PRNGKey(0)
    kw1, kb1, kw2, kb2, kx1, kx2, kx3 = jax.random.split(key, 7)

    # PyTorch Linear default init: U(-1/sqrt(fan_in), 1/sqrt(fan_in))
    bound1 = 1.0 / jnp.sqrt(jnp.float32(IN_F))
    bound2 = 1.0 / jnp.sqrt(jnp.float32(HID))
    w1 = jax.random.uniform(kw1, (HID, IN_F), jnp.float32, -bound1, bound1)
    b1 = jax.random.uniform(kb1, (HID,), jnp.float32, -bound1, bound1)
    w2 = jax.random.uniform(kw2, (OUT_F, HID), jnp.float32, -bound2, bound2)
    b2 = jax.random.uniform(kb2, (OUT_F,), jnp.float32, -bound2, bound2)

    # (1) The original spec shape: x1 = torch.randn(1, 3, 3)
    x_spec = jax.random.normal(kx1, (1, 3, IN_F), jnp.float32)
    out_spec = model_forward(x_spec, w1, b1, w2, b2)
    jax.block_until_ready(out_spec)
    assert out_spec.shape == (1, OUT_F, 3)
    assert jnp.allclose(out_spec, _reference(x_spec, w1, b1, w2, b2), atol=1e-5, rtol=1e-5)

    # (2) Aligned, multi-batch case: whole-M tiles, grid parallel over B.
    x_a = jax.random.normal(kx2, (2, 256, IN_F), jnp.float32)
    out_a = model_forward(x_a, w1, b1, w2, b2)
    jax.block_until_ready(out_a)
    assert out_a.shape == (2, OUT_F, 256)
    assert jnp.allclose(out_a, _reference(x_a, w1, b1, w2, b2), atol=1e-5, rtol=1e-5)

    # (3) Unaligned M with B=1: exercises the masked partial last block and the
    #     >=2 M-tile split for v7x megacore.
    x_u = jax.random.normal(kx3, (1, 520, IN_F), jnp.float32)
    out_u = model_forward(x_u, w1, b1, w2, b2)
    jax.block_until_ready(out_u)
    assert out_u.shape == (1, OUT_F, 520)
    assert jnp.allclose(out_u, _reference(x_u, w1, b1, w2, b2), atol=1e-5, rtol=1e-5)

    print("KERNEL_OK")
</pallas_src>

<mosaic_0001>
module attributes {stable_mosaic.version = 11 : i64} {
  func.func @_fused_linear_kernel(%arg0: i32, %arg1: i32, %arg2: memref<1x3x3xf32, #tpu.memory_space<vmem>>, %arg3: memref<3x3xf32, #tpu.memory_space<vmem>>, %arg4: memref<3x1xf32, #tpu.memory_space<vmem>>, %arg5: memref<1x3x3xf32, #tpu.memory_space<vmem>>) attributes {dimension_semantics = [#tpu.dimension_semantics<parallel>, #tpu.dimension_semantics<parallel>], iteration_bounds = array<i64: 1, 1>, scalar_prefetch = 0 : i64, scratch_operands = 0 : i64, tpu.core_type = #tpu.core_type<tc>, window_params = [{transform_indices = @transform_0, window_bounds = array<i64: 1, 3, 3>}, {pipeline_mode = #tpu.pipeline_mode<synchronous>, transform_indices = @transform_1, window_bounds = array<i64: 3, 3>}, {pipeline_mode = #tpu.pipeline_mode<synchronous>, transform_indices = @transform_2, window_bounds = array<i64: 3, 1>}, {transform_indices = @transform_3, window_bounds = array<i64: 1, 3, 3>}]} {
    %c0 = arith.constant 0 : index
    %c0_0 = arith.constant 0 : index
    %c0_1 = arith.constant 0 : index
    %0 = vector.load %arg2[%c0, %c0_0, %c0_1] : memref<1x3x3xf32, #tpu.memory_space<vmem>>, vector<1x3x3xf32>
    %1 = vector.shape_cast %0 : vector<1x3x3xf32> to vector<3x3xf32>
    %c0_2 = arith.constant 0 : index
    %c0_3 = arith.constant 0 : index
    %2 = vector.load %arg3[%c0_2, %c0_3] : memref<3x3xf32, #tpu.memory_space<vmem>>, vector<3x3xf32>
    %c0_4 = arith.constant 0 : index
    %c0_5 = arith.constant 0 : index
    %3 = vector.load %arg4[%c0_4, %c0_5] : memref<3x1xf32, #tpu.memory_space<vmem>>, vector<3x1xf32>
    %4 = vector.extract_strided_slice %2 {offsets = [0, 0], sizes = [3, 1], strides = [1, 1]} : vector<3x3xf32> to vector<3x1xf32>
    %5 = vector.extract_strided_slice %1 {offsets = [0, 0], sizes = [1, 3], strides = [1, 1]} : vector<3x3xf32> to vector<1x3xf32>
    %6 = vector.broadcast %4 : vector<3x1xf32> to vector<3x3xf32>
    %7 = vector.broadcast %5 : vector<1x3xf32> to vector<3x3xf32>
    %8 = arith.mulf %6, %7 : vector<3x3xf32>
    %9 = vector.broadcast %3 : vector<3x1xf32> to vector<3x3xf32>
    %10 = arith.addf %8, %9 : vector<3x3xf32>
    %11 = vector.extract_strided_slice %2 {offsets = [0, 1], sizes = [3, 1], strides = [1, 1]} : vector<3x3xf32> to vector<3x1xf32>
    %12 = vector.extract_strided_slice %1 {offsets = [1, 0], sizes = [1, 3], strides = [1, 1]} : vector<3x3xf32> to vector<1x3xf32>
    %13 = vector.broadcast %11 : vector<3x1xf32> to vector<3x3xf32>
    %14 = vector.broadcast %12 : vector<1x3xf32> to vector<3x3xf32>
    %15 = arith.mulf %13, %14 : vector<3x3xf32>
    %16 = arith.addf %10, %15 : vector<3x3xf32>
    %17 = vector.extract_strided_slice %2 {offsets = [0, 2], sizes = [3, 1], strides = [1, 1]} : vector<3x3xf32> to vector<3x1xf32>
    %18 = vector.extract_strided_slice %1 {offsets = [2, 0], sizes = [1, 3], strides = [1, 1]} : vector<3x3xf32> to vector<1x3xf32>
    %19 = vector.broadcast %17 : vector<3x1xf32> to vector<3x3xf32>
    %20 = vector.broadcast %18 : vector<1x3xf32> to vector<3x3xf32>
    %21 = arith.mulf %19, %20 : vector<3x3xf32>
    %22 = arith.addf %16, %21 : vector<3x3xf32>
    %c0_6 = arith.constant 0 : index
    %c0_7 = arith.constant 0 : index
    %c0_8 = arith.constant 0 : index
    %23 = vector.load %arg5[%c0_6, %c0_7, %c0_8] : memref<1x3x3xf32, #tpu.memory_space<vmem>>, vector<1x3x3xf32>
    %24 = vector.shape_cast %23 : vector<1x3x3xf32> to vector<3x3xf32>
    %25 = vector.shape_cast %22 : vector<3x3xf32> to vector<1x3x3xf32>
    tpu.vector_store %arg5[%c0_6, %c0_7, %c0_8], %25 {strides = array<i32>} : memref<1x3x3xf32, #tpu.memory_space<vmem>>, vector<1x3x3xf32>,
    return
  }
  func.func @transform_0(%arg0: i32, %arg1: i32) -> (i32, i32, i32) {
    %c0_i32 = arith.constant 0 : i32
    %c0_i32_0 = arith.constant 0 : i32
    return %arg0, %c0_i32, %arg1 : i32, i32, i32
  }
  func.func @transform_1(%arg0: i32, %arg1: i32) -> (i32, i32) {
    %c0_i32 = arith.constant 0 : i32
    %c0_i32_0 = arith.constant 0 : i32
    %c0_i32_1 = arith.constant 0 : i32
    return %c0_i32, %c0_i32_0 : i32, i32
  }
  func.func @transform_2(%arg0: i32, %arg1: i32) -> (i32, i32) {
    %c0_i32 = arith.constant 0 : i32
    %c0_i32_0 = arith.constant 0 : i32
    %c0_i32_1 = arith.constant 0 : i32
    return %c0_i32, %c0_i32_0 : i32, i32
  }
  func.func @transform_3(%arg0: i32, %arg1: i32) -> (i32, i32, i32) {
    %c0_i32 = arith.constant 0 : i32
    %c0_i32_0 = arith.constant 0 : i32
    return %arg0, %c0_i32, %arg1 : i32, i32, i32
  }
}

</mosaic_0001>

<bundles_post_ra>
// kernel: tpu_custom_call.1
= control target key start
LH: loop header
LB: loop body
LE: loop exit
PB: predicated region body
PF: predicated region fallthrough
CT: control target
= control target key end

     0   :  { %v66_v0 = vmov 0   ;;  %v67_v1 = vmov 1   ;;  %v68_v4 = vmov 2   ;;  %v22_v5 = vlaneseq  ;;  %s101_s1 = inlined_call_operand.vmem [shape: f32[3,3], index: 1, kind: input, shape index: {}]   ;;  %s102_s2 = inlined_call_operand.vmem [shape: f32[3,1], index: 2, kind: input, shape index: {}]   ;;  %s103_s0 = inlined_call_operand.vmem [shape: f32[1,3,3], index: 0, kind: input, shape index: {}]   ;;  %s104_s3 = inlined_call_operand.vmem [shape: f32[1,3,3], index: 3, kind: output, shape index: {}]  }
   0x1   :  { %62 = vset.pattern.permute.xlu0 %v66_v0  ;;  %63 = vset.pattern.permute.xlu1 %v67_v1  ;;  %v15_v2 = vld [vmem:[%s101_s1] sm:$0x7]  ;;  %vm53_vm0 = vcmask 18432  }
   0x2   :  { %19 = vperm.xlu0 %62, %v15_v2   ;;  %34 = vperm.xlu1 %63, %v15_v2   ;;  %v16_v3 = vld [vmem:[%s102_s2] sm:$0x7]  ;;  %v23_v6 = vshrl.u32 %v22_v5, 7 }
   0x3   :  { %v14_v8 = vld [vmem:[%s103_s0] sm:$0x7] }
   0x4   :  { %v24_v7 = vsub.s32 0, %v23_v6  ;;  %v39_v9 = vsub.s32 1, %v23_v6  ;;  %v49_v10 = vsub.s32 2, %v23_v6 }
   0x6   :  { %29 = vperm.xlu0 %62, %v16_v3   ;;  %64 = vset.pattern.permute.xlu1 %v68_v4  ;;  %v25_v11 = vrot.slane %v14_v8, %v24_v7  ;;  %v40_v14 = vrot.slane %v14_v8, %v39_v9  ;;  %v50_v15 = vrot.slane %v14_v8, %v49_v10 }
   0x7   :  { %44 = vperm.xlu1 %64, %v15_v2  }
   0xa   :  { %65 = vset.pattern.permute.xlu0 %v68_v4 }
  0x81   :  { %v20_v12 = vpop.permute.xlu0 %19  ;;  %v35_v13 = vpop.permute.xlu1 %34 }
  0x82   :  { %v26_v16 = vmul.f32 %v25_v11, %v20_v12  ;;  %v41_v18 = vmul.f32 %v40_v14, %v35_v13 }
  0x85   :  { %v30_v17 = vpop.permute.xlu0 %29 }
  0x86   :  { %v32_v19 = vadd.f32 %v30_v17, %v26_v16  ;;  %v45_v20 = vpop.permute.xlu1 %44 }
  0x87   :  { %v51_v21 = vmul.f32 %v50_v15, %v45_v20 }
  0x88   :  { %v42_v22 = vadd.f32 %v41_v18, %v32_v19 }
  0x8a   :  { %v52_v23 = vadd.f32 %v51_v21, %v42_v22 }
  0x8c   :  { %54 = vst.msk [vmem:[%s104_s3] sm:$0x7] %vm53_vm0, %v52_v23 }

</bundles_post_ra>
